<compile_context>
chip_gen: v7x
topology: tpu7x:2x2x1
jax: 0.10.0
libtpu: 0.0.40
codegen_flags: <defaults>
</compile_context>

<pallas_src>
import numpy as np
import jax
import jax.numpy as jnp
from jax.experimental import pallas as pl
from jax.experimental.pallas import tpu as pltpu


# ----------------------------- plain-JAX glue ------------------------------

def _fold_att(att, out_hw, P):
    """nn.Fold(output_size=out_hw, kernel=(P,P), stride=(P,P)) applied to
    att.transpose(-1, -2).  att: (B, L, P*P)  ->  (B, out_h, out_w).
    stride == kernel, so this is a pure (free) index reshuffle done as XLA glue."""
    B, L, KK = att.shape
    Ho, Wo = out_hw
    nbh = (Ho - P) // P + 1
    nbw = (Wo - P) // P + 1
    assert L == nbh * nbw and KK == P * P
    blocks = att.reshape(B, nbh, nbw, P, P)                    # (B, bh, bw, kh, kw)
    body = blocks.transpose(0, 1, 3, 2, 4).reshape(B, nbh * P, nbw * P)
    out = jnp.zeros((B, Ho, Wo), att.dtype)
    return out.at[:, :nbh * P, :nbw * P].set(body)


# ----------------------------- fused Pallas kernel --------------------------

def _scse_fused_kernel(x_ref, a_ref, w1_ref, b1_ref, w2_ref, b2_ref,
                       ws_ref, bs_ref, out_ref):
    # x_ref : (C, tD, HW)  VMEM  input slab (all channels, tD depth rows), HW on lanes
    # a_ref : (HW, HW)     VMEM  folded attention, grid-resident (constant index_map)
    # w1_ref: (C, C)       VMEM  cSE conv1 weight (out, in), resident
    # b1_ref: (C, 1)       VMEM
    # w2_ref: (C, C)       VMEM  cSE conv2 weight (out, in), resident
    # b2_ref: (C, 1)       VMEM
    # ws_ref: (C,)         SMEM  sSE conv weight (single output channel)
    # bs_ref: (1,)         SMEM  sSE conv bias
    x = x_ref[...]
    C, tD, HW = x.shape

    def leaky(t):  # LeakyReLU(negative_slope=0.2): max(t, 0.2*t) == where(t>0, t, 0.2*t)
        return jnp.maximum(t, 0.2 * t)

    # ---- cSE: pool over (H, W), then two 1x1x1 convs as (C,C)x(C,tD) MXU matmuls ----
    # TODO(synk): strict PyTorch AdaptiveAvgPool2d(1) rejects 5-D input; we use the
    # "pool the trailing (H, W) dims" interpretation so the Conv3d stack is well-formed.
    pooled = jnp.mean(x, axis=-1)                                          # (C, tD)
    h1 = leaky(jnp.dot(w1_ref[...], pooled,
                       preferred_element_type=jnp.float32) + b1_ref[...])  # (C, tD)
    cse = leaky(jnp.dot(w2_ref[...], h1,
                        preferred_element_type=jnp.float32) + b2_ref[...])  # (C, tD)

    # ---- sSE: 1x1x1 conv C -> 1 as an accumulating scalar*slab loop ----
    # (no (C, tD, HW) product is materialized; for very large C this would instead be a
    #  single (1,C)x(C, tD*HW) MXU dot on a lane-dense x layout)
    s = ws_ref[0] * x[0]
    for c in range(1, C):
        s = s + ws_ref[c] * x[c]
    sse = leaky(s + bs_ref[0])                                             # (tD, HW)

    # ---- pre = x * (cSE + sSE)   (gating factored; stays in VMEM) ----
    pre = x * (cse[:, :, None] + sse[None, :, :])                          # (C, tD, HW)

    # ---- pre + LeakyReLU(matmul(pre, A)) as ONE (C*tD, HW) x (HW, HW) MXU matmul ----
    pre2 = pre.reshape(C * tD, HW)               # merges leading dims only (tD % 8 == 0)
    res = jnp.dot(pre2, a_ref[...], preferred_element_type=jnp.float32)    # (C*tD, HW)
    out_ref[...] = (pre2 + leaky(res)).reshape(C, tD, HW)


# ----------------------------- forward wrapper -----------------------------

def scse_forward(x, att, params, patch_size=9, block_d=8):
    """Pallas implementation of SCSEModule.forward (single fused kernel, grid over D)."""
    B, C, D, H, W = x.shape
    HW = H * W
    assert B == 1 and H == 1 and W == D, \
        "SCSEModule.forward is only shape-consistent for B == 1, H == 1, W == D"
    W1, b1, W2, b2, ws, bs = params
    Co = W1.shape[0]
    assert Co == C, "x * cSE(x) only broadcasts when out_channels == in_channels"
    assert D % block_d == 0 and (block_d % 8 == 0 or block_d == D), \
        "block_d must divide D and be a multiple of 8 (sublane tiling)"

    # fold(att.transpose(-1,-2)) -> (D, HW); free index reshuffle, no Pallas work needed.
    A = _fold_att(att.astype(jnp.float32), (D, HW), patch_size)[0]         # (D, HW)

    grid = (D // block_d,)
    out = pl.pallas_call(
        _scse_fused_kernel,
        out_shape=jax.ShapeDtypeStruct((C, D, HW), jnp.float32),
        grid=grid,
        in_specs=[
            # x: tiled along D, double-buffered by the default pipeline
            pl.BlockSpec((C, block_d, HW), lambda d: (0, d, 0)),
            # A + cSE weights/biases: constant block index => VMEM-resident across steps
            pl.BlockSpec((HW, HW), lambda d: (0, 0)),
            pl.BlockSpec((C, C), lambda d: (0, 0)),
            pl.BlockSpec((C, 1), lambda d: (0, 0)),
            pl.BlockSpec((C, C), lambda d: (0, 0)),
            pl.BlockSpec((C, 1), lambda d: (0, 0)),
            # sSE weight/bias: scalars in SMEM (cheap scalar reads, no (8,128) padding)
            pl.BlockSpec(memory_space=pltpu.MemorySpace.SMEM),
            pl.BlockSpec(memory_space=pltpu.MemorySpace.SMEM),
        ],
        out_specs=pl.BlockSpec((C, block_d, HW), lambda d: (0, d, 0)),
        compiler_params=pltpu.CompilerParams(
            dimension_semantics=("parallel",)),   # D-slabs are independent (2 TCs on v7x)
    )(
        x.reshape(C, D, HW).astype(jnp.float32),
        A,
        W1.astype(jnp.float32),                       # (C_out, C_in) — used directly
        b1.reshape(C, 1).astype(jnp.float32),
        W2.astype(jnp.float32),
        b2.reshape(C, 1).astype(jnp.float32),
        ws.reshape(C).astype(jnp.float32),
        bs.reshape(1).astype(jnp.float32),
    )
    return out.reshape(B, C, D, H, W)


# ----------------------------- pure-JAX reference --------------------------

def scse_reference(x, att, params, patch_size=9):
    W1, b1, W2, b2, ws, bs = params
    B, C, D, H, Wd = x.shape
    hp = jax.lax.Precision.HIGHEST
    leaky = lambda t: jnp.where(t > 0.0, t, 0.2 * t)
    # cSE
    pooled = jnp.mean(x, axis=(3, 4), keepdims=True)                      # (B,C,D,1,1)
    h1 = leaky(jnp.einsum('oc,bcdhw->bodhw', W1, pooled, precision=hp)
               + b1[None, :, None, None, None])
    cse = leaky(jnp.einsum('oc,bcdhw->bodhw', W2, h1, precision=hp)
                + b2[None, :, None, None, None])
    # sSE
    sse = leaky(jnp.einsum('oc,bcdhw->bodhw', ws, x, precision=hp)
                + bs[None, :, None, None, None])
    pre = x * cse + x * sse
    # fold(att.transpose(-1,-2)) and the final residual attention
    A = _fold_att(att, (D, H * Wd), patch_size)[:, None]                  # (B,1,D,H*W)
    return pre + leaky(jnp.matmul(pre, A))


# ----------------------------------- main -----------------------------------

if __name__ == "__main__":
    P = 9                                     # hard-coded patch_size of the module
    B, C, D, H, W = 1, 8, 24, 1, 24           # H == 1, W == D  (module's shape constraint)
    HW = H * W
    L = ((D - P) // P + 1) * ((HW - P) // P + 1)    # number of fold blocks -> 2*2 = 4

    key = jax.random.PRNGKey(0)
    ks = jax.random.split(key, 8)
    x = jax.random.normal(ks[0], (B, C, D, H, W), jnp.float32)
    att = jax.random.normal(ks[1], (B, L, P * P), jnp.float32)

    scale = 0.3
    W1 = scale * jax.random.normal(ks[2], (C, C), jnp.float32)   # cSE conv1 (out, in)
    b1 = scale * jax.random.normal(ks[3], (C,), jnp.float32)
    W2 = scale * jax.random.normal(ks[4], (C, C), jnp.float32)   # cSE conv2 (out, in)
    b2 = scale * jax.random.normal(ks[5], (C,), jnp.float32)
    ws = scale * jax.random.normal(ks[6], (1, C), jnp.float32)   # sSE conv  (out=1, in)
    bs = scale * jax.random.normal(ks[7], (1,), jnp.float32)
    params = (W1, b1, W2, b2, ws, bs)

    out = scse_forward(x, att, params, patch_size=P, block_d=8)
    out = jax.block_until_ready(out)

    ref = scse_reference(x, att, params, patch_size=P)
    assert out.shape == x.shape
    np.testing.assert_allclose(np.asarray(out), np.asarray(ref), rtol=1e-3, atol=2e-4)

    print("KERNEL_OK")
</pallas_src>

<mosaic_0001>
module attributes {stable_mosaic.version = 11 : i64} {
  func.func @_scse_fused_kernel(%arg0: i32, %arg1: memref<8x8x24xf32, #tpu.memory_space<vmem>>, %arg2: memref<24x24xf32, #tpu.memory_space<vmem>>, %arg3: memref<8x8xf32, #tpu.memory_space<vmem>>, %arg4: memref<8x1xf32, #tpu.memory_space<vmem>>, %arg5: memref<8x8xf32, #tpu.memory_space<vmem>>, %arg6: memref<8x1xf32, #tpu.memory_space<vmem>>, %arg7: memref<8xf32, #tpu.memory_space<smem>>, %arg8: memref<1xf32, #tpu.memory_space<smem>>, %arg9: memref<8x8x24xf32, #tpu.memory_space<vmem>>) attributes {dimension_semantics = [#tpu.dimension_semantics<parallel>], iteration_bounds = array<i64: 3>, scalar_prefetch = 0 : i64, scratch_operands = 0 : i64, tpu.core_type = #tpu.core_type<tc>, window_params = [{transform_indices = @transform_0, window_bounds = array<i64: 8, 8, 24>}, {pipeline_mode = #tpu.pipeline_mode<synchronous>, transform_indices = @transform_1, window_bounds = array<i64: 24, 24>}, {pipeline_mode = #tpu.pipeline_mode<synchronous>, transform_indices = @transform_2, window_bounds = array<i64: 8, 8>}, {pipeline_mode = #tpu.pipeline_mode<synchronous>, transform_indices = @transform_3, window_bounds = array<i64: 8, 1>}, {pipeline_mode = #tpu.pipeline_mode<synchronous>, transform_indices = @transform_4, window_bounds = array<i64: 8, 8>}, {pipeline_mode = #tpu.pipeline_mode<synchronous>, transform_indices = @transform_5, window_bounds = array<i64: 8, 1>}, {transform_indices = @transform_6, window_bounds = array<i64: 8>}, {transform_indices = @transform_7, window_bounds = array<i64: 1>}, {transform_indices = @transform_8, window_bounds = array<i64: 8, 8, 24>}]} {
    %c0 = arith.constant 0 : index
    %c0_0 = arith.constant 0 : index
    %c0_1 = arith.constant 0 : index
    %0 = vector.load %arg1[%c0, %c0_0, %c0_1] : memref<8x8x24xf32, #tpu.memory_space<vmem>>, vector<8x8x24xf32>
    %cst = arith.constant dense<0.000000e+00> : vector<8x8xf32>
    %1 = vector.multi_reduction <add>, %0, %cst [2] : vector<8x8x24xf32> to vector<8x8xf32>
    %cst_2 = arith.constant 2.400000e+01 : f32
    %2 = vector.broadcast %cst_2 : f32 to vector<8x8xf32>
    %3 = arith.divf %1, %2 : vector<8x8xf32>
    %c0_3 = arith.constant 0 : index
    %c0_4 = arith.constant 0 : index
    %4 = vector.load %arg3[%c0_3, %c0_4] : memref<8x8xf32, #tpu.memory_space<vmem>>, vector<8x8xf32>
    %cst_5 = arith.constant dense<0.000000e+00> : vector<8x8xf32>
    %5 = tpu.matmul %4, %3, %cst_5 {dimension_numbers = #tpu.dot_dimension_numbers<[1], [0], [0], [1], [0, 0, 1, 1], [], []>} : vector<8x8xf32>, vector<8x8xf32>, vector<8x8xf32> -> vector<8x8xf32>
    %c0_6 = arith.constant 0 : index
    %c0_7 = arith.constant 0 : index
    %6 = vector.load %arg4[%c0_6, %c0_7] : memref<8x1xf32, #tpu.memory_space<vmem>>, vector<8x1xf32>
    %7 = vector.broadcast %6 : vector<8x1xf32> to vector<8x8xf32>
    %8 = arith.addf %5, %7 : vector<8x8xf32>
    %cst_8 = arith.constant 2.000000e-01 : f32
    %9 = vector.broadcast %cst_8 : f32 to vector<8x8xf32>
    %10 = arith.mulf %9, %8 : vector<8x8xf32>
    %11 = arith.maximumf %8, %10 : vector<8x8xf32>
    %c0_9 = arith.constant 0 : index
    %c0_10 = arith.constant 0 : index
    %12 = vector.load %arg5[%c0_9, %c0_10] : memref<8x8xf32, #tpu.memory_space<vmem>>, vector<8x8xf32>
    %cst_11 = arith.constant dense<0.000000e+00> : vector<8x8xf32>
    %13 = tpu.matmul %12, %11, %cst_11 {dimension_numbers = #tpu.dot_dimension_numbers<[1], [0], [0], [1], [0, 0, 1, 1], [], []>} : vector<8x8xf32>, vector<8x8xf32>, vector<8x8xf32> -> vector<8x8xf32>
    %c0_12 = arith.constant 0 : index
    %c0_13 = arith.constant 0 : index
    %14 = vector.load %arg6[%c0_12, %c0_13] : memref<8x1xf32, #tpu.memory_space<vmem>>, vector<8x1xf32>
    %15 = vector.broadcast %14 : vector<8x1xf32> to vector<8x8xf32>
    %16 = arith.addf %13, %15 : vector<8x8xf32>
    %cst_14 = arith.constant 2.000000e-01 : f32
    %17 = vector.broadcast %cst_14 : f32 to vector<8x8xf32>
    %18 = arith.mulf %17, %16 : vector<8x8xf32>
    %19 = arith.maximumf %16, %18 : vector<8x8xf32>
    %c0_15 = arith.constant 0 : index
    %20 = memref.load %arg7[%c0_15] : memref<8xf32, #tpu.memory_space<smem>>
    %21 = vector.extract_strided_slice %0 {offsets = [0, 0, 0], sizes = [1, 8, 24], strides = [1, 1, 1]} : vector<8x8x24xf32> to vector<1x8x24xf32>
    %22 = vector.shape_cast %21 : vector<1x8x24xf32> to vector<8x24xf32>
    %23 = vector.broadcast %20 : f32 to vector<8x24xf32>
    %24 = arith.mulf %23, %22 : vector<8x24xf32>
    %c1 = arith.constant 1 : index
    %25 = memref.load %arg7[%c1] : memref<8xf32, #tpu.memory_space<smem>>
    %26 = vector.extract_strided_slice %0 {offsets = [1, 0, 0], sizes = [1, 8, 24], strides = [1, 1, 1]} : vector<8x8x24xf32> to vector<1x8x24xf32>
    %27 = vector.shape_cast %26 : vector<1x8x24xf32> to vector<8x24xf32>
    %28 = vector.broadcast %25 : f32 to vector<8x24xf32>
    %29 = arith.mulf %28, %27 : vector<8x24xf32>
    %30 = arith.addf %24, %29 : vector<8x24xf32>
    %c2 = arith.constant 2 : index
    %31 = memref.load %arg7[%c2] : memref<8xf32, #tpu.memory_space<smem>>
    %32 = vector.extract_strided_slice %0 {offsets = [2, 0, 0], sizes = [1, 8, 24], strides = [1, 1, 1]} : vector<8x8x24xf32> to vector<1x8x24xf32>
    %33 = vector.shape_cast %32 : vector<1x8x24xf32> to vector<8x24xf32>
    %34 = vector.broadcast %31 : f32 to vector<8x24xf32>
    %35 = arith.mulf %34, %33 : vector<8x24xf32>
    %36 = arith.addf %30, %35 : vector<8x24xf32>
    %c3 = arith.constant 3 : index
    %37 = memref.load %arg7[%c3] : memref<8xf32, #tpu.memory_space<smem>>
    %38 = vector.extract_strided_slice %0 {offsets = [3, 0, 0], sizes = [1, 8, 24], strides = [1, 1, 1]} : vector<8x8x24xf32> to vector<1x8x24xf32>
    %39 = vector.shape_cast %38 : vector<1x8x24xf32> to vector<8x24xf32>
    %40 = vector.broadcast %37 : f32 to vector<8x24xf32>
    %41 = arith.mulf %40, %39 : vector<8x24xf32>
    %42 = arith.addf %36, %41 : vector<8x24xf32>
    %c4 = arith.constant 4 : index
    %43 = memref.load %arg7[%c4] : memref<8xf32, #tpu.memory_space<smem>>
    %44 = vector.extract_strided_slice %0 {offsets = [4, 0, 0], sizes = [1, 8, 24], strides = [1, 1, 1]} : vector<8x8x24xf32> to vector<1x8x24xf32>
    %45 = vector.shape_cast %44 : vector<1x8x24xf32> to vector<8x24xf32>
    %46 = vector.broadcast %43 : f32 to vector<8x24xf32>
    %47 = arith.mulf %46, %45 : vector<8x24xf32>
    %48 = arith.addf %42, %47 : vector<8x24xf32>
    %c5 = arith.constant 5 : index
    %49 = memref.load %arg7[%c5] : memref<8xf32, #tpu.memory_space<smem>>
    %50 = vector.extract_strided_slice %0 {offsets = [5, 0, 0], sizes = [1, 8, 24], strides = [1, 1, 1]} : vector<8x8x24xf32> to vector<1x8x24xf32>
    %51 = vector.shape_cast %50 : vector<1x8x24xf32> to vector<8x24xf32>
    %52 = vector.broadcast %49 : f32 to vector<8x24xf32>
    %53 = arith.mulf %52, %51 : vector<8x24xf32>
    %54 = arith.addf %48, %53 : vector<8x24xf32>
    %c6 = arith.constant 6 : index
    %55 = memref.load %arg7[%c6] : memref<8xf32, #tpu.memory_space<smem>>
    %56 = vector.extract_strided_slice %0 {offsets = [6, 0, 0], sizes = [1, 8, 24], strides = [1, 1, 1]} : vector<8x8x24xf32> to vector<1x8x24xf32>
    %57 = vector.shape_cast %56 : vector<1x8x24xf32> to vector<8x24xf32>
    %58 = vector.broadcast %55 : f32 to vector<8x24xf32>
    %59 = arith.mulf %58, %57 : vector<8x24xf32>
    %60 = arith.addf %54, %59 : vector<8x24xf32>
    %c7 = arith.constant 7 : index
    %61 = memref.load %arg7[%c7] : memref<8xf32, #tpu.memory_space<smem>>
    %62 = vector.extract_strided_slice %0 {offsets = [7, 0, 0], sizes = [1, 8, 24], strides = [1, 1, 1]} : vector<8x8x24xf32> to vector<1x8x24xf32>
    %63 = vector.shape_cast %62 : vector<1x8x24xf32> to vector<8x24xf32>
    %64 = vector.broadcast %61 : f32 to vector<8x24xf32>
    %65 = arith.mulf %64, %63 : vector<8x24xf32>
    %66 = arith.addf %60, %65 : vector<8x24xf32>
    %c0_16 = arith.constant 0 : index
    %67 = memref.load %arg8[%c0_16] : memref<1xf32, #tpu.memory_space<smem>>
    %68 = vector.broadcast %67 : f32 to vector<8x24xf32>
    %69 = arith.addf %66, %68 : vector<8x24xf32>
    %cst_17 = arith.constant 2.000000e-01 : f32
    %70 = vector.broadcast %cst_17 : f32 to vector<8x24xf32>
    %71 = arith.mulf %70, %69 : vector<8x24xf32>
    %72 = arith.maximumf %69, %71 : vector<8x24xf32>
    %73 = vector.shape_cast %19 : vector<8x8xf32> to vector<8x8x1xf32>
    %74 = vector.shape_cast %72 : vector<8x24xf32> to vector<1x8x24xf32>
    %75 = vector.broadcast %73 : vector<8x8x1xf32> to vector<8x8x24xf32>
    %76 = vector.broadcast %74 : vector<1x8x24xf32> to vector<8x8x24xf32>
    %77 = arith.addf %75, %76 : vector<8x8x24xf32>
    %78 = arith.mulf %0, %77 : vector<8x8x24xf32>
    %79 = vector.shape_cast %78 : vector<8x8x24xf32> to vector<64x24xf32>
    %c0_18 = arith.constant 0 : index
    %c0_19 = arith.constant 0 : index
    %80 = vector.load %arg2[%c0_18, %c0_19] : memref<24x24xf32, #tpu.memory_space<vmem>>, vector<24x24xf32>
    %cst_20 = arith.constant dense<0.000000e+00> : vector<64x24xf32>
    %81 = tpu.matmul %79, %80, %cst_20 {dimension_numbers = #tpu.dot_dimension_numbers<[1], [0], [0], [1], [0, 0, 1, 1], [], []>} : vector<64x24xf32>, vector<24x24xf32>, vector<64x24xf32> -> vector<64x24xf32>
    %cst_21 = arith.constant 2.000000e-01 : f32
    %82 = vector.broadcast %cst_21 : f32 to vector<64x24xf32>
    %83 = arith.mulf %82, %81 : vector<64x24xf32>
    %84 = arith.maximumf %81, %83 : vector<64x24xf32>
    %85 = arith.addf %79, %84 : vector<64x24xf32>
    %86 = vector.shape_cast %85 : vector<64x24xf32> to vector<8x8x24xf32>
    %c0_22 = arith.constant 0 : index
    %c0_23 = arith.constant 0 : index
    %c0_24 = arith.constant 0 : index
    %87 = vector.load %arg9[%c0_22, %c0_23, %c0_24] : memref<8x8x24xf32, #tpu.memory_space<vmem>>, vector<8x8x24xf32>
    tpu.vector_store %arg9[%c0_22, %c0_23, %c0_24], %86 {strides = array<i32>} : memref<8x8x24xf32, #tpu.memory_space<vmem>>, vector<8x8x24xf32>,
    return
  }
  func.func @transform_0(%arg0: i32) -> (i32, i32, i32) {
    %c0_i32 = arith.constant 0 : i32
    %c0_i32_0 = arith.constant 0 : i32
    %c0_i32_1 = arith.constant 0 : i32
    return %c0_i32, %arg0, %c0_i32_0 : i32, i32, i32
  }
  func.func @transform_1(%arg0: i32) -> (i32, i32) {
    %c0_i32 = arith.constant 0 : i32
    %c0_i32_0 = arith.constant 0 : i32
    %c0_i32_1 = arith.constant 0 : i32
    return %c0_i32, %c0_i32_0 : i32, i32
  }
  func.func @transform_2(%arg0: i32) -> (i32, i32) {
    %c0_i32 = arith.constant 0 : i32
    %c0_i32_0 = arith.constant 0 : i32
    %c0_i32_1 = arith.constant 0 : i32
    return %c0_i32, %c0_i32_0 : i32, i32
  }
  func.func @transform_3(%arg0: i32) -> (i32, i32) {
    %c0_i32 = arith.constant 0 : i32
    %c0_i32_0 = arith.constant 0 : i32
    %c0_i32_1 = arith.constant 0 : i32
    return %c0_i32, %c0_i32_0 : i32, i32
  }
  func.func @transform_4(%arg0: i32) -> (i32, i32) {
    %c0_i32 = arith.constant 0 : i32
    %c0_i32_0 = arith.constant 0 : i32
    %c0_i32_1 = arith.constant 0 : i32
    return %c0_i32, %c0_i32_0 : i32, i32
  }
  func.func @transform_5(%arg0: i32) -> (i32, i32) {
    %c0_i32 = arith.constant 0 : i32
    %c0_i32_0 = arith.constant 0 : i32
    %c0_i32_1 = arith.constant 0 : i32
    return %c0_i32, %c0_i32_0 : i32, i32
  }
  func.func @transform_6(%arg0: i32) -> i32 {
    %c0_i32 = arith.constant 0 : i32
    %c0_i32_0 = arith.constant 0 : i32
    return %c0_i32 : i32
  }
  func.func @transform_7(%arg0: i32) -> i32 {
    %c0_i32 = arith.constant 0 : i32
    %c0_i32_0 = arith.constant 0 : i32
    return %c0_i32 : i32
  }
  func.func @transform_8(%arg0: i32) -> (i32, i32, i32) {
    %c0_i32 = arith.constant 0 : i32
    %c0_i32_0 = arith.constant 0 : i32
    %c0_i32_1 = arith.constant 0 : i32
    return %c0_i32, %arg0, %c0_i32_0 : i32, i32, i32
  }
}

</mosaic_0001>

<bundles_post_ra>
// kernel: tpu_custom_call.1
= control target key start
LH: loop header
LB: loop body
LE: loop exit
PB: predicated region body
PF: predicated region fallthrough
CT: control target
= control target key end

     0   :  { %s1696_s0 = inlined_call_operand.hbm [shape: f32[8,24,24], index: 0, kind: input, shape index: {}]   ;;  %s1697_s1 = inlined_call_operand.vmem [shape: f32[24,24], index: 1, kind: input, shape index: {}]   ;;  %s1698_s2 = inlined_call_operand.hbm [shape: f32[8,8], index: 2, kind: input, shape index: {}]   ;;  %s1699_s3 = inlined_call_operand.vmem [shape: f32[8,1], index: 3, kind: input, shape index: {}]   ;;  %s1700_s4 = inlined_call_operand.vmem [shape: f32[8,8], index: 4, kind: input, shape index: {}]   ;;  %s1701_s5 = inlined_call_operand.vmem [shape: f32[8,1], index: 5, kind: input, shape index: {}]   ;;  %s1702_s6 = inlined_call_operand.vmem [shape: f32[8], index: 6, kind: input, shape index: {}]   ;;  %s1703_s7 = inlined_call_operand.<no memory space> [shape: f32[1], index: 7, kind: input, shape index: {}]   ;;  %s1704_s8 = inlined_call_operand.hbm [shape: f32[8,24,24], index: 8, kind: output, shape index: {}]  }
   0x1   :  { %1710 = sst [smem:[#allocation15_spill]] %s1698_s2 }
   0x2   :  { %13 = sst [smem:[#allocation2]] %s1703_s7 }
   0x3   :  { %14 = vsyncpa [#allocation4], 0 }
   0x4   :  { %16 = vsyncpa [#allocation4 + $0x1], 0 }
   0x5   :  { %17 = vsyncpa [#allocation8], 0 }
   0x6   :  { %18 = vsyncpa [#allocation6], 0 }
   0x7   :  { %19 = vsyncpa [#allocation5], 0 }
   0x8   :  { %21 = vsyncpa [#allocation5 + $0x1], 0  ;;  %s1367_s29 = smov 0   ;;  %s1369_s30 = smov 0  }
   0x9   :  { %s1371_s9 = smov 0   ;;  %s1373_s10 = smov 0  }
   0xa LB: > { %s1388_s7 = sadd.s32 4294967295, %s1304_s10   ;;  %s995_s11 = sadd.s32 4294967294, %s1304_s10   ;;  %s1304_s10 = sphi %s1373_s10, %s1731_s10   ;;  %s1300_s9 = sphi %s1371_s9, %s1730_s9   ;;  %s1296_s30 = sphi %s1369_s30, %s1729_s30   ;;  %s1292_s29 = sphi %s1367_s29, %s1728_s29  }
   0xb   : > { %s1392_s12 = sadd.s32 1, %s1304_s10   ;;  %s34_s13 = sadd.s32 1, %s1300_s9 }
   0xc   : > { %s31_s14 = ssub.s32 %s1304_s10, %s1392_s12  ;;  %p41_p0 = scmp.ne.s32.totalorder %s1300_s9, %s1296_s30 }
   0xd   : > { %p32_p1 = scmp.eq.s32.totalorder %s31_s14, 0  ;;  %p42_p2 = scmp.eq.s32.totalorder %s1304_s10, 0 }
   0xe   : > { %p47_p3 = scmp.ne.s32.totalorder %s1296_s30, %s1292_s29  ;;  %p1705_p4 = scmp.eq.s32.totalorder %s1388_s7, 0 }
   0xf   : > { %s1404_s15 = scalar_select %p32_p1, %s1300_s9, %s34_s13  }
  0x10   : > { %p1406_p5 = por %p42_p2, %p41_p0  ;;  %p1412_p6 = por %p1705_p4, %p47_p3 }
  0x11   : > { %p218_p7 = scmp.eq.s32.totalorder %s1388_s7, 2  ;;  %p224_p8 = scmp.eq.s32.totalorder %s995_s11, 2 }
  0x12   : > { %s1712_s17 = scalar_select %p1412_p6, 1, 0 }
  0x13   : > { %p996_p9 = scmp.ge.s32.totalorder %s1304_s10, 1  ;;  %p231_p10 = scmp.lt.s32.totalorder %s1304_s10, 4 }
  0x14   : > { %p1419_p11 = por %p218_p7, %p41_p0  ;;  %p1423_p12 = por %p224_p8, %p47_p3 }
  0x15   : > { %p1427_p13 = pnand %p996_p9, %p231_p10  ;;  %s1306_s21 = smov [#allocation7]  }
  0x16   : > { %s1713_s18 = scalar_select %p1419_p11, 1, 0 }
  0x17   : > { %s1714_s19 = scalar_select %p1423_p12, 1, 0 }
  0x18   : > { %s1715_s20 = scalar_select %p1427_p13, 1, 0 }
  0x19   : > { %p1091_p1 = pneg %p1427_p13  ;;  %s247_s22 = sshll.u32 %s1306_s21, 4  ;;  %s248_s22 = int_to_ptr.vmem [resolvable:$true] %s247_s22 }
  0x1a   : > { %p1108_p2 = scmp.lt.s32.totalorder %s1304_s10, 3  ;;  %s267_s26 = sshll.u32 %s1702_s6, 4  ;;  %s1449_s26 = int_to_ptr.vmem [resolvable:$true] %s267_s26 }
  0x1b   : > { %p1436_p0 = pnand %p1091_p1, %p1705_p4  ;;  %s1718_s2 = sld [smem:[#allocation15_spill]] }
  0x1c   : > { %p1445_p3 = pnand %p1108_p2, %p1406_p5 }
  0x1d   : > { %p1159_p8 = pneg %p1436_p0 }
  0x1e   : > { %s1717_s27 = scalar_select %p1445_p3, 1, 0 }
  0x21   : > { %s1157_s13 = scalar_lea.hbm %s1718_s2, 128 }
  0x22   : > { %p1158_p7 = scmp.ne.s32.totalorder %s1718_s2, %s1157_s13  ;;  %p1164_p5 = scmp.lt.u32.totalorder %s1157_s13, %s1718_s2 }
  0x24   : > { %p1160_p9 = pnand %p1159_p8, %p1158_p7 }
  0x26   : > { %p1161_p10 = pneg %p1160_p9 }
  0x28   : > { %p1166_p1 = pnand %p1164_p5, %p1161_p10 }
  0x2a   : > { %1169 = shalt.err (!%p1166_p1)
}
  0x2b   : > { %s1170_s25 = scalar_lea.vmem %s248_s22, 128  ;;  %p1178_p11 = scmp.lt.s32.totalorder %s248_s22, %s248_s22 }
  0x2c   : > { %p1171_p2 = scmp.ne.s32.totalorder %s248_s22, %s1170_s25  ;;  %p1179_p6 = scmp.lt.s32.totalorder %s1170_s25, %s1170_s25 }
  0x2e   : > { %p1173_p4 = pnand %p1171_p2, %p1159_p8  ;;  %p1180_p13 = por %p1179_p6, %p1178_p11 }
  0x30   : > { %p1174_p12 = pneg %p1173_p4 }
  0x32   : > { %p1181_p3 = pnand %p1180_p13, %p1174_p12 }
  0x34   : > { %1184 = shalt.err (!%p1181_p3)
}
  0x35   : > { %1094 = dma.hbm_to_vmem [thread:$0]  (!%p1436_p0), %s1718_s2, 128, %s248_s22, [#allocation8]  }
  0x36   : > { %s281_s13 = sand.u32 1, %s1300_s9   ;;  %s1185_s14 = scalar_lea.vmem %s1449_s26, 16 }
  0x37   : > { %p1186_p7 = scmp.ne.s32.totalorder %s1449_s26, %s1185_s14  ;;  %p1193_p11 = scmp.lt.s32.totalorder %s1449_s26, %s1449_s26 }
  0x38   : > { %p1194_p12 = scmp.lt.s32.totalorder %s1185_s14, %s1185_s14 }
  0x39   : > { %p1188_p4 = pnand %p1186_p7, %p1159_p8 }
  0x3a   : > { %p1195_p13 = por %p1194_p12, %p1193_p11 }
  0x3b   : > { %p1189_p6 = pneg %p1188_p4 }
  0x3d   : > { %p1196_p3 = pnand %p1195_p13, %p1189_p6 }
  0x3f   : > { %1199 = shalt.err (!%p1196_p3)
}
  0x40   : > { %s1307_s21 = smov [#allocation9]   ;;  %s1000_s22 = sshll.u32 %s281_s13, 6 }
  0x41   : > { %1097 = dma.vmem_to_smem (!%p1436_p0), %s1449_s26, 16, %s1307_s21, [#allocation6]  }
  0x42   : > { %s1001_s16 = sshll.u32 %s1304_s10, 7  ;;  %s285_s11 = scalar_lea.vmem [#allocation3], %s1000_s22 }
  0x43   : > { %s1488_s28 = scalar_lea.hbm %s1696_s0, %s1001_s16  ;;  %s291_s14 = sshll.u32 %s285_s11, 4  ;;  %s1490_s14 = int_to_ptr.vmem [resolvable:$true] %s291_s14 }
  0x44   : > { %s1492_s23 = scalar_lea.sflag [#allocation4], %s281_s13  ;;  %s1200_s2 = scalar_lea.hbm %s1488_s28, 1024 }
  0x45   : > { %p1201_p8 = scmp.ne.s32.totalorder %s1488_s28, %s1200_s2  ;;  %p1719_p0 = scmp.ne.s32.totalorder %s1717_s27, 0 }
  0x46   : > { %s1205_s16 = scalar_lea.hbm %s1696_s0, 3072  ;;  %p1206_p1 = scmp.lt.u32.totalorder %s1488_s28, %s1696_s0 }
  0x47   : > { %p1202_p9 = pneg %p1719_p0  ;;  %p1207_p2 = scmp.lt.u32.totalorder %s1205_s16, %s1200_s2 }
  0x48   : > { %p1209_p4 = scmp.lt.u32.totalorder %s1200_s2, %s1488_s28 }
  0x49   : > { %p1203_p10 = pnand %p1202_p9, %p1201_p8  ;;  %p1208_p7 = por %p1207_p2, %p1206_p1 }
  0x4b   : > { %p1204_p5 = pneg %p1203_p10  ;;  %p1210_p6 = por %p1209_p4, %p1208_p7 }
  0x4d   : > { %p1211_p11 = pnand %p1210_p6, %p1204_p5 }
  0x4f   : > { %1214 = shalt.err (!%p1211_p11)
}
  0x50   : > { %s1215_s13 = scalar_lea.vmem %s1490_s14, 1024  ;;  %s1308_s22 = smov [#allocation3]  }
  0x51   : > { %p1216_p12 = scmp.ne.s32.totalorder %s1490_s14, %s1215_s13  ;;  %s1220_s11 = sshll.u32 %s1308_s22, 4  ;;  %s1221_s11 = int_to_ptr.vmem [resolvable:$false] %s1220_s11 }
  0x52   : > { %s1222_s26 = scalar_lea.vmem %s1221_s11, 2048  ;;  %p1223_p8 = scmp.lt.s32.totalorder %s1490_s14, %s1221_s11 }
  0x53   : > { %p1218_p13 = pnand %p1216_p12, %p1202_p9  ;;  %p1224_p10 = scmp.lt.s32.totalorder %s1222_s26, %s1215_s13 }
  0x55   : > { %p1219_p3 = pneg %p1218_p13  ;;  %p1225_p1 = por %p1224_p10, %p1223_p8 }
  0x57   : > { %p1226_p2 = pnand %p1225_p1, %p1219_p3 }
  0x59   : > { %1229 = shalt.err (!%p1226_p2)
}
  0x5a   : > { %s1309_s2 = smov 384   ;;  %s1310_s21 = smov 128  }
  0x5b   : > { %s1311_s16 = smov 8   ;;  %p1720_p9 = scmp.ne.s32.totalorder %s1715_s20, 0 }
  0x5c   : > { %1101 = dma.hbm_to_vmem [thread:$0]  (!%p1719_p0), %s1488_s28, 1024, %s1490_s14, %s1492_s23, %s1309_s2, %s1310_s21, %s1311_s16  }
  0x5d   : > { %303 = sbr.rel (%p1720_p9) target bundleno = 1090 (0x442), region = 52  ;;  %s1523_s24 = sand.u32 (!%p1720_p9), 1, %s1296_s30  }
  0x5e   : > { %s1003_s25 = sshll.u32 (!%p1720_p9), %s1523_s24, 6  ;;  %s306_s13 = scalar_lea.sflag (!%p1720_p9), [#allocation4], %s1523_s24 }
  0x5f   : > { %s309_s22 = scalar_lea.vmem (!%p1720_p9), [#allocation3], %s1003_s25  ;;  %p1721_p5 = scmp.ne.s32.totalorder (!%p1720_p9), %s1712_s17, 0 }
  0x64   : > { %1275 = dma.done.wait (%p1721_p5), %s306_s13, 1024  }
  0x65   : > { %1277 = vsyncadd (%p1721_p5), %s306_s13, 4294966272  ;;  %p1722_p0 = scmp.eq.s32.totalorder %s1388_s7, 0 }
  0x67   : > { %1279 = dma.done.wait (%p1722_p0), [#allocation8], 128   ;;  %p1723_p7 = pmov %p1722_p0 }
  0x68   : > { %p1724_p4 = pmov %p1722_p0 }
  0x69   : > { %1281 = vsyncadd (%p1723_p7), [#allocation8], 4294967168 }
  0x6a   : > { %1283 = dma.done.wait (%p1724_p4), [#allocation6], 16   ;;  %p1725_p6 = pmov %p1722_p0 }
  0x6c   : > { %1285 = vsyncadd (%p1725_p6), [#allocation6], 4294967280 }
  0x6d   : > { %322 = sfence }
  0x6e   : > { %v1541_v0 = vld [vmem:[%s309_s22] sm:$0xff]  ;;  %vm359_vm0 = vcmask 195584   ;;  %v1543_v1 = vld [vmem:[%s309_s22 + $0x10] sm:$0xff]  ;;  %v1545_v2 = vld [vmem:[%s309_s22 + $0x8] sm:$0xff]  ;;  %v1312_v16 = vmov 0.0   ;;  %vm1313_vm1 = vmmov 0   ;;  %v408_v19 = vlaneseq }
  0x6f   : > { %v360_v3 = vsel %vm359_vm0, %v1541_v0, 0.0  ;;  %v366_v4 = vsel %vm359_vm0, %v1543_v1, 0.0  ;;  %v1551_v5 = vld [vmem:[%s309_s22 + $0x18] sm:$0xff]  ;;  %v363_v6 = vsel %vm359_vm0, %v1545_v2, 0.0  ;;  %v1557_v8 = vld [vmem:[%s309_s22 + $0x20] sm:$0xff]  ;;  %v1559_v9 = vld [vmem:[%s309_s22 + $0x28] sm:$0xff]  ;;  %1043 = vmatprep.subr.mxu0 %v1312_v16  ;;  %1048 = vmatprep.subr.mxu1 %v1312_v16 }
  0x70   : > { %361 = vadd.xlane.f32.xlu0 %v360_v3  ;;  %367 = vadd.xlane.f32.xlu1 %v366_v4  ;;  %v369_v7 = vsel %vm359_vm0, %v1551_v5, 0.0  ;;  %v372_v10 = vsel %vm359_vm0, %v1557_v8, 0.0  ;;  %v375_v11 = vsel %vm359_vm0, %v1559_v9, 0.0  ;;  %v1565_v12 = vld [vmem:[%s309_s22 + $0x30] sm:$0xff]  ;;  %v1567_v13 = vld [vmem:[%s309_s22 + $0x38] sm:$0xff]  ;;  %v394_v17 = vld [vmem:[%s1699_s3] sm:$0xff] }
  0x71   : > { %v378_v14 = vsel %vm359_vm0, %v1565_v12, 0.0  ;;  %v381_v15 = vsel %vm359_vm0, %v1567_v13, 0.0  ;;  %1045 = vmatprep.mubr.msk.f32.mxu0 %vm1313_vm1, %v1312_v16  ;;  %1050 = vmatprep.mubr.msk.f32.mxu1 %vm1313_vm1, %v1312_v16  ;;  %v1314_v18 = vmov 0   ;;  %v409_v20 = vand.u32 127, %v408_v19  ;;  %v393_v53 = vld [vmem:[#allocation7] sm:$0xff]  ;;  %s615_s22 = sld [smem:[#allocation9]] }
  0x72   : > { %1155 = vset.pattern.permute.xlu0 %v1314_v18  ;;  %1156 = vset.pattern.permute.xlu1 %v1314_v18  ;;  %v1576_v21 = vshrl.u32 %v408_v19, 7  ;;  %vm442_vm2 = vcmask 1041409   ;;  %vm444_vm3 = vcmask 1042434   ;;  %vm446_vm4 = vcmask 1043459   ;;  %v534_v55 = vld [vmem:[%s1701_s5] sm:$0xff]  ;;  %v725_v18 = vld [vmem:[%s1697_s1 + $0x10] sm:$0xff] }
  0x73   : > { %vm448_vm5 = vcmask 1044484   ;;  %vm450_vm6 = vcmask 1045509   ;;  %vm452_vm7 = vcmask 1046534   ;;  %vm454_vm8 = vcmask 1047559   ;;  %v533_v62 = vld [vmem:[%s1700_s4] sm:$0xff]  ;;  %s1009_s17 = sld [smem:[#allocation9 + $0x1]] }
  0x74   : > { %364 = vadd.xlane.f32.xlu0 %v363_v6  ;;  %370 = vadd.xlane.f32.xlu1 %v369_v7  ;;  %v412_v24 = vsub.s32 %v409_v20, %v1576_v21  ;;  %vm457_vm9 = vcmask 64512   ;;  %v723_v4 = vld [vmem:[%s1697_s1] sm:$0xff]  ;;  %v724_v6 = vld [vmem:[%s1697_s1 + $0x8] sm:$0xff]  ;;  %v653_v16 = vsub.s32 0, %v1576_v21  ;;  %s1010_s20 = sld [smem:[#allocation9 + $0x2]]  ;;  %s1011_s27 = sld [smem:[#allocation9 + $0x3]] }
  0x75   : > { %s1012_s28 = sld [smem:[#allocation9 + $0x4]]  ;;  %s1013_s14 = sld [smem:[#allocation9 + $0x5]] }
  0x76   : > { %s1014_s23 = sld [smem:[#allocation9 + $0x6]]  ;;  %s1015_s11 = sld [smem:[#allocation9 + $0x7]] }
  0x77   : > { %s646_s26 = sld [smem:[#allocation2]]  ;;  %s1628_s2 = scalar_lea.vmem [#allocation10], %s1003_s25 }
  0x78   : > { %373 = vadd.xlane.f32.xlu0 %v372_v10  ;;  %376 = vadd.xlane.f32.xlu1 %v375_v11  ;;  %v1071_v11 = vpack.c.bf16 %v724_v6, %v723_v4  ;;  %s1025_s25 = sshll.u32 %s1388_s7, 7  ;;  %s900_s21 = sshll.u32 %s1628_s2, 4  ;;  %s1649_s21 = int_to_ptr.vmem [resolvable:$true] %s900_s21 }
  0x79   : > { %s888_s7 = scalar_lea.sflag [#allocation5], %s1523_s24  ;;  %p1726_p12 = scmp.ne.s32.totalorder %s1713_s18, 0 }
  0x7c   : > { %379 = vadd.xlane.f32.xlu0 %v378_v14  ;;  %382 = vadd.xlane.f32.xlu1 %v381_v15  ;;  %v702_v15 = vsub.s32 7, %v1576_v21 }
  0x8d   : > { %537 = vperm.xlu1 %1156, %v534_v55  }
  0x92   : > { %397 = vperm.xlu0 %1155, %v394_v17  }
  0xfd   : > { %v362_v22 = vpop.xlane.xlu0 %361  ;;  %v368_v23 = vpop.xlane.xlu1 %367 }
  0xfe   : > { %v385_v25 = vmul.f32 0.041666668, %v362_v22  ;;  %v387_v26 = vmul.f32 0.041666668, %v368_v23  ;;  %v681_v22 = vsub.s32 4, %v1576_v21 }
 0x100   : > { %v413_v31 = vrot.slane %v385_v25, %v412_v24  ;;  %v421_v34 = vrot.slane %v387_v26, %v412_v24  ;;  %v688_v26 = vsub.s32 5, %v1576_v21 }
 0x101   : > { %v365_v27 = vpop.xlane.xlu0 %364  ;;  %v371_v28 = vpop.xlane.xlu1 %370 }
 0x102   : > { %v386_v29 = vmul.f32 0.041666668, %v365_v27  ;;  %v388_v30 = vmul.f32 0.041666668, %v371_v28  ;;  %v667_v28 = vsub.s32 2, %v1576_v21 }
 0x104   : > { %v417_v32 = vrot.slane %v386_v29, %v412_v24  ;;  %v425_v33 = vrot.slane %v388_v30, %v412_v24  ;;  %v695_v30 = vsub.s32 6, %v1576_v21 }
 0x105   : > { %v374_v35 = vpop.xlane.xlu0 %373  ;;  %v377_v36 = vpop.xlane.xlu1 %376 }
 0x106   : > { %v443_v37 = vsel %vm442_vm2, %v417_v32, %v413_v31  ;;  %v389_v38 = vmul.f32 0.041666668, %v374_v35  ;;  %v390_v39 = vmul.f32 0.041666668, %v377_v36  ;;  %v674_v32 = vsub.s32 3, %v1576_v21 }
 0x107   : > { %v445_v40 = vsel %vm444_vm3, %v421_v34, %v443_v37  ;;  %v616_v34 = vstv %s615_s22  ;;  %v619_v35 = vstv %s1009_s17  ;;  %s1645_s22 = scalar_lea.hbm %s1704_s8, %s1025_s25  ;;  %s1230_s17 = scalar_lea.vmem %s1649_s21, 1024 }
 0x108   : > { %v447_v41 = vsel %vm446_vm4, %v425_v33, %v445_v40  ;;  %v429_v42 = vrot.slane %v389_v38, %v412_v24  ;;  %v433_v43 = vrot.slane %v390_v39, %v412_v24  ;;  %v617_v36 = vmul.f32 %v616_v34, %v1541_v0  ;;  %p1231_p11 = scmp.ne.s32.totalorder %s1649_s21, %s1230_s17 }
 0x109   : > { %v380_v44 = vpop.xlane.xlu0 %379  ;;  %v383_v45 = vpop.xlane.xlu1 %382  ;;  %v620_v37 = vmul.f32 %v619_v35, %v1545_v2  ;;  %v623_v38 = vstv %s1010_s20  ;;  %s1315_s20 = smov [#allocation10]  }
 0x10a   : > { %v449_v46 = vsel %vm448_vm5, %v429_v42, %v447_v41  ;;  %v391_v47 = vmul.f32 0.041666668, %v380_v44  ;;  %v392_v48 = vmul.f32 0.041666668, %v383_v45  ;;  %v624_v39 = vmul.f32 %v623_v38, %v1543_v1  ;;  %p1232_p13 = pnand %p1231_p11, %p1726_p12 }
 0x10b   : > { %v451_v51 = vsel %vm450_vm6, %v433_v43, %v449_v46  ;;  %v621_v40 = vadd.f32 %v620_v37, %v617_v36  ;;  %v627_v41 = vstv %s1011_s27  ;;  %v631_v43 = vstv %s1012_s28  ;;  %s1234_s27 = sshll.u32 %s1315_s20, 4  ;;  %s1235_s27 = int_to_ptr.vmem [resolvable:$false] %s1234_s27 }
 0x10c   : > { %v437_v49 = vrot.slane %v391_v47, %v412_v24  ;;  %v441_v50 = vrot.slane %v392_v48, %v412_v24  ;;  %v660_v24 = vsub.s32 1, %v1576_v21  ;;  %v628_v42 = vmul.f32 %v627_v41, %v1551_v5  ;;  %p1233_p3 = pneg %p1232_p13  ;;  %s1236_s28 = scalar_lea.vmem %s1235_s27, 2048 }
 0x10d   : > { %v538_v63 = vpop.permute.xlu1 %537  ;;  %v625_v21 = vadd.f32 %v624_v39, %v621_v40  ;;  %v632_v45 = vmul.f32 %v631_v43, %v1557_v8  ;;  %v635_v46 = vstv %s1013_s14  ;;  %p1237_p8 = scmp.lt.s32.totalorder %s1649_s21, %s1235_s27  ;;  %p1238_p10 = scmp.lt.s32.totalorder %s1236_s28, %s1230_s17 }
 0x10e   : > { %v453_v52 = vsel %vm452_vm7, %v437_v49, %v451_v51  ;;  %v636_v48 = vmul.f32 %v635_v46, %v1559_v9  ;;  %v639_v49 = vstv %s1014_s23 }
 0x10f   : > { %v455_v54 = vsel %vm454_vm8, %v441_v50, %v453_v52  ;;  %v629_v44 = vadd.f32 %v628_v42, %v625_v21  ;;  %v640_v51 = vmul.f32 %v639_v49, %v1565_v12  ;;  %v643_v52 = vstv %s1015_s11  ;;  %p1239_p1 = por %p1238_p10, %p1237_p8 }
 0x110   : > { %1044 = vmatpush3.msra.mxu0 %v455_v54  ;;  %v644_v54 = vmul.f32 %v643_v52, %v1567_v13 }
 0x111   : > { %1046 = vmatmul.mubr.msk.f32.vlgmr.msra.gmra.mrb[0].mxu0 %vm457_vm9, %v393_v53  ;;  %v398_v56 = vpop.permute.xlu0 %397  ;;  %1072 = vmatprep.subr.bf16.mxu0 %v1071_v11  ;;  %v633_v47 = vadd.f32 %v632_v45, %v629_v44  ;;  %p1240_p2 = pnand %p1239_p1, %p1233_p3 }
 0x112   : > { %1074 = vmatpush3.bf16.msra.mxu0 %v1071_v11 }
 0x113   : > { %1057 = vmatprep.subr.mxu0 %v725_v18  ;;  %v637_v50 = vadd.f32 %v636_v48, %v633_v47 }
 0x115   : > { %v641_v53 = vadd.f32 %v640_v51, %v637_v50 }
 0x116   : > { %1058 = vmatpush3.msra.mxu0 %v725_v18 }
 0x117   : > { %v645_v55 = vadd.f32 %v644_v54, %v641_v53 }
 0x1e4   : > { %v527_v57 = vpop.f32.mrb[0].mxu0 }
 0x1e5   : > { %v528_v58 = vadd.f32 %v527_v57, %v398_v56  ;;  %v1047_v59 = vpop.f32.mrb[1].mxu0  ;;  %v647_v56 = vstv %s646_s26 }
 0x1e6   : > { %v648_v57 = vadd.f32 %v647_v56, %v645_v55 }
 0x1e7   : > { %v531_v60 = vmul.f32 0.2, %v528_v58 }
 0x1e9   : > { %v532_v61 = vmax.f32 %v528_v58, %v531_v60  ;;  %v649_v58 = vmul.f32 0.2, %v648_v57 }
 0x1eb   : > { %1049 = vmatpush3.msra.mxu1 %v532_v61  ;;  %v650_v59 = vmax.f32 %v648_v57, %v649_v58 }
 0x1ec   : > { %1051 = vmatmul.mubr.msk.f32.vlgmr.msra.gmra.mrb[0].mxu1 %vm457_vm9, %v533_v62  ;;  %1075 = vmatprep.subr.bf16.mxu1 %v1071_v11 }
 0x1ed   : > { %1077 = vmatpush3.bf16.msra.mxu1 %v1071_v11 }
 0x1ee   : > { %1076 = vmatprep.subr.mxu1 %v725_v18 }
 0x1f1   : > { %1078 = vmatpush3.msra.mxu1 %v725_v18 }
 0x2bf   : > { %v609_v3 = vpop.f32.mrb[0].mxu1 }
 0x2c0   : > { %v610_v7 = vadd.f32 %v609_v3, %v538_v63  ;;  %v1052_v10 = vpop.f32.mrb[1].mxu1 }
 0x2c2   : > { %v613_v14 = vmul.f32 0.2, %v610_v7 }
 0x2c4   : > { %v614_v17 = vmax.f32 %v610_v7, %v613_v14 }
 0x2c6   : > { %v703_v19 = vrot.slane %v614_v17, %v702_v15  ;;  %v654_v20 = vrot.slane %v614_v17, %v653_v16  ;;  %v682_v23 = vrot.slane %v614_v17, %v681_v22  ;;  %v661_v25 = vrot.slane %v614_v17, %v660_v24 }
 0x2c7   : > { %v689_v27 = vrot.slane %v614_v17, %v688_v26  ;;  %v668_v29 = vrot.slane %v614_v17, %v667_v28  ;;  %v696_v31 = vrot.slane %v614_v17, %v695_v30  ;;  %v675_v33 = vrot.slane %v614_v17, %v674_v32 }
 0x2c8   : > { %705 = vbcast.lane.b32.xlu0 %v703_v19, 256  ;;  %656 = vbcast.lane.b32.xlu1 %v654_v20, 256 }
 0x2cc   : > { %684 = vbcast.lane.b32.xlu1 %v682_v23, 256 }
 0x2d0   : > { %663 = vbcast.lane.b32.xlu1 %v661_v25, 256 }
 0x2d4   : > { %691 = vbcast.lane.b32.xlu1 %v689_v27, 256 }
 0x2d8   : > { %670 = vbcast.lane.b32.xlu1 %v668_v29, 256 }
 0x2dc   : > { %698 = vbcast.lane.b32.xlu1 %v696_v31, 256 }
 0x2e0   : > { %677 = vbcast.lane.b32.xlu1 %v675_v33, 256 }
 0x33a   : > { %v657_v60 = vpop.permute.xlu1 %656 }
 0x33b   : > { %v707_v61 = vadd.f32 %v657_v60, %v650_v59 }
 0x33d   : > { %v715_v62 = vmul.f32 %v707_v61, %v1541_v0  ;;  %v706_v0 = vpop.permute.xlu0 %705 }
 0x33e   : > { %v685_v63 = vpop.permute.xlu1 %684 }
 0x33f   : > { %v711_v3 = vadd.f32 %v685_v63, %v650_v59  ;;  %1059 = vmatprep.mubr.msk.f32.mxu0 %vm359_vm0, %v715_v62 }
 0x341   : > { %v719_v4 = vmul.f32 %v711_v3, %v1557_v8  ;;  %v714_v8 = vadd.f32 %v706_v0, %v650_v59 }
 0x342   : > { %v664_v6 = vpop.permute.xlu1 %663 }
 0x343   : > { %v708_v7 = vadd.f32 %v664_v6, %v650_v59  ;;  %1065 = vmatprep.mubr.msk.f32.mxu1 %vm359_vm0, %v719_v4  ;;  %v722_v22 = vmul.f32 %v714_v8, %v1567_v13 }
 0x345   : > { %v716_v10 = vmul.f32 %v708_v7, %v1545_v2 }
 0x346   : > { %v692_v11 = vpop.permute.xlu1 %691 }
 0x347   : > { %v712_v14 = vadd.f32 %v692_v11, %v650_v59  ;;  %1060 = vmatmul.mubr.msk.f32.vlgmr.msra.gmra.mrb[2].mxu0 %vm359_vm0, %v716_v10 }
 0x349   : > { %v720_v15 = vmul.f32 %v712_v14, %v1559_v9 }
 0x34a   : > { %v671_v16 = vpop.permute.xlu1 %670 }
 0x34b   : > { %v709_v17 = vadd.f32 %v671_v16, %v650_v59  ;;  %1066 = vmatmul.mubr.msk.f32.vlgmr.msra.gmra.mrb[2].mxu1 %vm359_vm0, %v720_v15 }
 0x34d   : > { %v717_v18 = vmul.f32 %v709_v17, %v1543_v1 }
 0x34e   : > { %v699_v19 = vpop.permute.xlu1 %698 }
 0x34f   : > { %v713_v20 = vadd.f32 %v699_v19, %v650_v59  ;;  %1062 = vmatprep.mubr.msk.f32.mxu0 %vm359_vm0, %v717_v18 }
 0x351   : > { %v721_v2 = vmul.f32 %v713_v20, %v1565_v12 }
 0x352   : > { %v678_v23 = vpop.permute.xlu1 %677 }
 0x353   : > { %v710_v24 = vadd.f32 %v678_v23, %v650_v59  ;;  %1068 = vmatprep.mubr.msk.f32.mxu1 %vm359_vm0, %v721_v2 }
 0x354   : > { %1069 = vmatmul.mubr.msk.f32.gmra.mrb[4].mxu1 %vm359_vm0, %v722_v22 }
 0x355   : > { %v718_v9 = vmul.f32 %v710_v24, %v1551_v5 }
 0x357   : > { %1063 = vmatmul.mubr.msk.f32.gmra.mrb[4].mxu0 %vm359_vm0, %v718_v9 }
 0x41a   : > { %v1061_v1 = vpop.f32.mrb[2].mxu0 }
 0x41b   : > { %v856_v25 = vmul.f32 0.2, %v1061_v1  ;;  %v816_v26 = vpop.f32.mrb[3].mxu0 }
 0x41c   : > { %v855_v27 = vmul.f32 0.2, %v816_v26 }
 0x41d   : > { %v864_v28 = vmax.f32 %v1061_v1, %v856_v25 }
 0x41e   : > { %v863_v29 = vmax.f32 %v816_v26, %v855_v27  ;;  %v1067_v12 = vpop.f32.mrb[2].mxu1 }
 0x41f   : > { %v872_v30 = vadd.f32 %v864_v28, %v716_v10  ;;  %v860_v13 = vmul.f32 0.2, %v1067_v12  ;;  %v836_v31 = vpop.f32.mrb[3].mxu1 }
 0x420   : > { %v871_v32 = vadd.f32 %v863_v29, %v715_v62  ;;  %v859_v33 = vmul.f32 0.2, %v836_v31 }
 0x421   : > { %880 = vst.msk [vmem:[%s1628_s2 + $0x8] sm:$0xff] %vm359_vm0, %v872_v30  ;;  %v868_v5 = vmax.f32 %v1067_v12, %v860_v13 }
 0x422   : > { %879 = vst.msk [vmem:[%s1628_s2] sm:$0xff] %vm359_vm0, %v871_v32  ;;  %v867_v34 = vmax.f32 %v836_v31, %v859_v33 }
 0x423   : > { %v876_v35 = vadd.f32 %v868_v5, %v720_v15 }
 0x424   : > { %v875_v36 = vadd.f32 %v867_v34, %v719_v4 }
 0x425   : > { %884 = vst.msk [vmem:[%s1628_s2 + $0x28] sm:$0xff] %vm359_vm0, %v876_v35 }
 0x426   : > { %883 = vst.msk [vmem:[%s1628_s2 + $0x20] sm:$0xff] %vm359_vm0, %v875_v36 }
 0x427   : > { %v1070_v37 = vpop.f32.mrb[4].mxu1 }
 0x428   : > { %v862_v38 = vmul.f32 0.2, %v1070_v37  ;;  %v846_v39 = vpop.f32.mrb[5].mxu1 }
 0x429   : > { %v861_v40 = vmul.f32 0.2, %v846_v39 }
 0x42a   : > { %v870_v41 = vmax.f32 %v1070_v37, %v862_v38  ;;  %v1064_v21 = vpop.f32.mrb[4].mxu0 }
 0x42b   : > { %v869_v42 = vmax.f32 %v846_v39, %v861_v40  ;;  %v858_v43 = vmul.f32 0.2, %v1064_v21  ;;  %v826_v44 = vpop.f32.mrb[5].mxu0 }
 0x42c   : > { %v878_v45 = vadd.f32 %v870_v41, %v722_v22  ;;  %v857_v46 = vmul.f32 0.2, %v826_v44 }
 0x42d   : > { %v877_v47 = vadd.f32 %v869_v42, %v721_v2  ;;  %v866_v48 = vmax.f32 %v1064_v21, %v858_v43 }
 0x42e   : > { %886 = vst.msk [vmem:[%s1628_s2 + $0x38] sm:$0xff] %vm359_vm0, %v878_v45  ;;  %v865_v49 = vmax.f32 %v826_v44, %v857_v46 }
 0x42f   : > { %885 = vst.msk [vmem:[%s1628_s2 + $0x30] sm:$0xff] %vm359_vm0, %v877_v47  ;;  %v874_v50 = vadd.f32 %v866_v48, %v718_v9 }
 0x430   : > { %v873_v51 = vadd.f32 %v865_v49, %v717_v18 }
 0x431   : > { %882 = vst.msk [vmem:[%s1628_s2 + $0x18] sm:$0xff] %vm359_vm0, %v874_v50 }
 0x432   : > { %881 = vst.msk [vmem:[%s1628_s2 + $0x10] sm:$0xff] %vm359_vm0, %v873_v51 }
 0x433   : > { %1243 = shalt.err (!%p1240_p2)
}
 0x434   : > { %s1244_s14 = scalar_lea.hbm %s1645_s22, 1024  ;;  %s1248_s26 = scalar_lea.hbm %s1704_s8, 3072 }
 0x435   : > { %p1245_p9 = scmp.ne.s32.totalorder %s1645_s22, %s1244_s14  ;;  %p1249_p7 = scmp.lt.u32.totalorder %s1645_s22, %s1704_s8 }
 0x436   : > { %p1250_p4 = scmp.lt.u32.totalorder %s1248_s26, %s1244_s14  ;;  %p1252_p11 = scmp.lt.u32.totalorder %s1244_s14, %s1645_s22 }
 0x437   : > { %p1246_p5 = pnand %p1245_p9, %p1726_p12 }
 0x438   : > { %p1251_p6 = por %p1250_p4, %p1249_p7 }
 0x439   : > { %p1247_p0 = pneg %p1246_p5 }
 0x43a   : > { %p1253_p13 = por %p1252_p11, %p1251_p6 }
 0x43c   : > { %p1254_p3 = pnand %p1253_p13, %p1247_p0 }
 0x43e   : > { %1257 = shalt.err (!%p1254_p3)
}
 0x43f   : > { %s1316_s16 = smov 128   ;;  %s1317_s13 = smov 384  }
 0x440   : > { %s1318_s17 = smov 8  }
 0x441   : > { %1089 = dma.vmem_to_hbm [thread:$0]  (%p1726_p12), %s1649_s21, 1024, %s1645_s22, %s888_s7, %s1316_s16, %s1317_s13, %s1318_s17  }
 0x442 PF: > { %p1111_p8 = scmp.ge.s32.totalorder %s1304_s10, 2  ;;  %s915_s20 = sand.u32 1, %s1292_s29  }
 0x443   : > { %p1727_p10 = scmp.ne.s32.totalorder %s1714_s19, 0  ;;  %s916_s27 = scalar_lea.sflag [#allocation5], %s915_s20 }
 0x445   : > { %p1103_p1 = pnand %p1111_p8, %p1727_p10 }
 0x447   : > { %1287 = dma.done.wait (!%p1103_p1), %s916_s27, 1024  }
 0x448   : > { %1289 = vsyncadd (!%p1103_p1), %s916_s27, 4294966272  ;;  %p24_p2 = scmp.ge.s32.totalorder %s1392_s12, 5   ;;  %s1728_s29 = smov %s1296_s30 }
 0x449   : > { %s1729_s30 = smov %s1300_s9  ;;  %s1730_s9 = smov %s1404_s15 }
 0x44a   : > { %s1731_s10 = smov %s1392_s12  ;;  %26 = sbr.rel (!%p24_p2) target bundleno = 10 (0xa), region = 106 }
 0x451   :  { %921 = vsyncpa [#allocation4], 1 }
 0x452   :  { %923 = vsyncpa [#allocation4 + $0x1], 1 }
 0x453   :  { %924 = vsyncpa [#allocation8], 1 }
 0x454   :  { %925 = vsyncpa [#allocation5], 1 }
 0x455   :  { %927 = vsyncpa [#allocation5 + $0x1], 1 }
 0x456   :  { %928 = vsyncpa [#allocation6], 1 }
 0x457   :  { %930 = vsyncpa [#allocation6 + $0x1], 1 }

</bundles_post_ra>
